<compile_context>
chip_gen: v7x
topology: tpu7x:2x2x1
jax: 0.10.0
libtpu: 0.0.40
codegen_flags: <defaults>
</compile_context>

<pallas_src>
import functools

import jax
import jax.numpy as jnp
from jax.experimental import pallas as pl
from jax.experimental.pallas import tpu as pltpu


def _layernorm_kernel(x_ref, a_ref, b_ref, o_ref, *, eps, features):
    x = x_ref[...].astype(jnp.float32)                       # (tile_rows, features)
    a = a_ref[...]                                           # (1, features) f32
    b = b_ref[...]                                           # (1, features) f32

    inv_n = 1.0 / float(features)                            # compile-time constants
    inv_nm1 = 1.0 / float(max(features - 1, 1))              # torch unbiased std (N-1)

    mean = jnp.sum(x, axis=-1, keepdims=True) * inv_n        # (tile_rows, 1)
    diff = x - mean
    var = jnp.sum(diff * diff, axis=-1, keepdims=True) * inv_nm1
    std = jnp.sqrt(var)
    # Exact reciprocal on the narrow (tile_rows, 1) column (NOT approx — keeps
    # the 1e-5 parity with torch); the full tile only sees multiplies.
    inv = 1.0 / (std + jnp.float32(eps))
    o_ref[...] = (a * (diff * inv) + b).astype(o_ref.dtype)


def _choose_tile_rows(rows, features, itemsize, budget_bytes=3 << 20, min_steps=8):
    """Row tile for the x/out blocks.

    Constraints (in priority order):
      1. x block (tile_rows * features * itemsize) stays under `budget_bytes`
         so double-buffered in+out blocks plus f32 intermediates fit v7x's
         64 MiB VMEM with room to spare (and v5e's 16 MiB scoped default is
         overridden anyway).
      2. At least `min_steps` grid steps when the row count allows it, so the
         pipeline double-buffers and v7x can split the row grid across its two
         TensorCores.
      3. tile_rows is a multiple of the packed-sublane count for the dtype
         (8 f32 / 16 bf16 / 32 int8-fp8) — no relayout or masked edge stores.
    Within those, the tile is as large as possible. No requirement that it
    divides `rows`: the grid uses pl.cdiv and Pallas masks the boundary block.
    """
    sublane = max(8, 32 // max(1, itemsize))        # 8 f32, 16 bf16, 32 int8/fp8
    if rows <= sublane:
        return rows                                 # single tiny block (full row dim)

    # Byte-budget cap on the tile (rounded down to a sublane multiple).
    cap = budget_bytes // max(1, features * itemsize)
    cap = max(sublane, cap - cap % sublane)

    # Rows per step if we want ~min_steps grid steps (rounded up to sublane).
    per_step = -(-rows // min_steps)
    per_step = per_step + (-per_step) % sublane
    per_step = max(sublane, per_step)

    return min(cap, per_step)


def layer_norm(x, a_2, b_2, eps=1e-6, tile_rows=None):
    """x: (..., features). a_2, b_2: (features,). Returns same shape/dtype as x."""
    orig_shape = x.shape
    features = orig_shape[-1]
    x2 = x.reshape(-1, features)                              # (rows, features)
    rows = x2.shape[0]

    itemsize = jnp.dtype(x.dtype).itemsize
    if tile_rows is None:
        tile_rows = _choose_tile_rows(rows, features, itemsize)
    tile_rows = min(tile_rows, max(rows, 1))

    grid = (pl.cdiv(rows, tile_rows),)                        # partial last block OK

    # Grid-invariant params: cast once here, resident in VMEM across grid steps.
    a2 = a_2.reshape(1, features).astype(jnp.float32)
    b2 = b_2.reshape(1, features).astype(jnp.float32)

    kernel = functools.partial(_layernorm_kernel, eps=eps, features=features)

    out = pl.pallas_call(
        kernel,
        out_shape=jax.ShapeDtypeStruct((rows, features), x.dtype),
        grid_spec=pltpu.PrefetchScalarGridSpec(
            num_scalar_prefetch=0,
            grid=grid,
            in_specs=[
                pl.BlockSpec((tile_rows, features), lambda i: (i, 0)),
                pl.BlockSpec((1, features), lambda i: (0, 0)),
                pl.BlockSpec((1, features), lambda i: (0, 0)),
            ],
            out_specs=pl.BlockSpec((tile_rows, features), lambda i: (i, 0)),
        ),
        compiler_params=pltpu.CompilerParams(
            dimension_semantics=("parallel",),   # rows shard across TCs on v7x
            vmem_limit_bytes=48 << 20,           # < 64 MiB v7x physical; ample for
                                                 # 2x in + 2x out ~3 MiB blocks + f32 temps
        ),
    )(x2, a2, b2)

    return out.reshape(orig_shape)


def _reference(x, a_2, b_2, eps):
    """Pure-JAX mirror of the torch forward (unbiased std, eps added to std)."""
    features = x.shape[-1]
    mean = jnp.mean(x, axis=-1, keepdims=True)
    std = jnp.sqrt(jnp.sum((x - mean) ** 2, axis=-1, keepdims=True) / (features - 1))
    return a_2 * (x - mean) / (std + eps) + b_2


if __name__ == "__main__":
    key = jax.random.PRNGKey(0)
    eps = 1e-6

    # --- Test 1: small shape consistent with the module (batch=2, seq=8, hidden=32) ---
    batch, seq, hidden = 2, 8, 32
    k1, k2, k3 = jax.random.split(key, 3)
    x = jax.random.normal(k1, (batch, seq, hidden), dtype=jnp.float32)
    a_2 = jnp.ones((hidden,), dtype=jnp.float32)   # matches nn.Parameter(torch.ones(features))
    b_2 = jnp.zeros((hidden,), dtype=jnp.float32)  # matches nn.Parameter(torch.zeros(features))

    out = jax.block_until_ready(layer_norm(x, a_2, b_2, eps=eps))
    ref = _reference(x, a_2, b_2, eps)
    assert out.shape == x.shape and out.dtype == x.dtype
    assert jnp.max(jnp.abs(out - ref)) < 1e-5, "mismatch vs reference (small shape)"

    # --- Test 2: lane-dense shape exercising the multi-step pipelined grid path ---
    b2_, s2_, h2_ = 4, 512, 512                    # rows=2048 -> tile_rows=256, grid=8
    x_big = jax.random.normal(k2, (b2_, s2_, h2_), dtype=jnp.float32)
    a_big = jnp.ones((h2_,), dtype=jnp.float32)
    b_big = jnp.zeros((h2_,), dtype=jnp.float32)

    out_big = jax.block_until_ready(layer_norm(x_big, a_big, b_big, eps=eps))
    ref_big = _reference(x_big, a_big, b_big, eps)
    assert out_big.shape == x_big.shape and out_big.dtype == x_big.dtype
    assert jnp.max(jnp.abs(out_big - ref_big)) < 1e-5, "mismatch vs reference (large shape)"

    # --- Test 3: row count not divisible by the tile -> cdiv grid + masked boundary ---
    b3_, s3_, h3_ = 3, 7, 128                      # rows=21, tile_rows=8, grid=3 (last partial)
    x_odd = jax.random.normal(k3, (b3_, s3_, h3_), dtype=jnp.float32)
    a_odd = jnp.ones((h3_,), dtype=jnp.float32)
    b_odd = jnp.zeros((h3_,), dtype=jnp.float32)

    out_odd = jax.block_until_ready(layer_norm(x_odd, a_odd, b_odd, eps=eps))
    ref_odd = _reference(x_odd, a_odd, b_odd, eps)
    assert out_odd.shape == x_odd.shape and out_odd.dtype == x_odd.dtype
    assert jnp.max(jnp.abs(out_odd - ref_odd)) < 1e-5, "mismatch vs reference (odd rows)"

    print("KERNEL_OK")
</pallas_src>

<mosaic_0001>
module attributes {stable_mosaic.version = 11 : i64} {
  func.func @_layernorm_kernel(%arg0: i32, %arg1: memref<8x32xf32, #tpu.memory_space<vmem>>, %arg2: memref<1x32xf32, #tpu.memory_space<vmem>>, %arg3: memref<1x32xf32, #tpu.memory_space<vmem>>, %arg4: memref<8x32xf32, #tpu.memory_space<vmem>>) attributes {dimension_semantics = [#tpu.dimension_semantics<parallel>], iteration_bounds = array<i64: 2>, scalar_prefetch = 0 : i64, scratch_operands = 0 : i64, tpu.core_type = #tpu.core_type<tc>, window_params = [{transform_indices = @transform_0, window_bounds = array<i64: 8, 32>}, {pipeline_mode = #tpu.pipeline_mode<synchronous>, transform_indices = @transform_1, window_bounds = array<i64: 1, 32>}, {pipeline_mode = #tpu.pipeline_mode<synchronous>, transform_indices = @transform_2, window_bounds = array<i64: 1, 32>}, {transform_indices = @transform_3, window_bounds = array<i64: 8, 32>}]} {
    %c0 = arith.constant 0 : index
    %c0_0 = arith.constant 0 : index
    %0 = vector.load %arg1[%c0, %c0_0] : memref<8x32xf32, #tpu.memory_space<vmem>>, vector<8x32xf32>
    %c0_1 = arith.constant 0 : index
    %c0_2 = arith.constant 0 : index
    %1 = vector.load %arg2[%c0_1, %c0_2] : memref<1x32xf32, #tpu.memory_space<vmem>>, vector<1x32xf32>
    %c0_3 = arith.constant 0 : index
    %c0_4 = arith.constant 0 : index
    %2 = vector.load %arg3[%c0_3, %c0_4] : memref<1x32xf32, #tpu.memory_space<vmem>>, vector<1x32xf32>
    %cst = arith.constant dense<0.000000e+00> : vector<8xf32>
    %3 = vector.multi_reduction <add>, %0, %cst [1] : vector<8x32xf32> to vector<8xf32>
    %4 = vector.shape_cast %3 : vector<8xf32> to vector<8x1xf32>
    %cst_5 = arith.constant 3.125000e-02 : f32
    %5 = vector.broadcast %cst_5 : f32 to vector<8x1xf32>
    %6 = arith.mulf %4, %5 : vector<8x1xf32>
    %7 = vector.broadcast %6 : vector<8x1xf32> to vector<8x32xf32>
    %8 = arith.subf %0, %7 : vector<8x32xf32>
    %9 = arith.mulf %8, %8 : vector<8x32xf32>
    %cst_6 = arith.constant dense<0.000000e+00> : vector<8xf32>
    %10 = vector.multi_reduction <add>, %9, %cst_6 [1] : vector<8x32xf32> to vector<8xf32>
    %11 = vector.shape_cast %10 : vector<8xf32> to vector<8x1xf32>
    %cst_7 = arith.constant 0.0322580636 : f32
    %12 = vector.broadcast %cst_7 : f32 to vector<8x1xf32>
    %13 = arith.mulf %11, %12 : vector<8x1xf32>
    %14 = math.sqrt %13 : vector<8x1xf32>
    %cst_8 = arith.constant 9.99999997E-7 : f32
    %15 = vector.broadcast %cst_8 : f32 to vector<8x1xf32>
    %16 = arith.addf %14, %15 : vector<8x1xf32>
    %cst_9 = arith.constant 1.000000e+00 : f32
    %17 = vector.broadcast %cst_9 : f32 to vector<8x1xf32>
    %18 = arith.divf %17, %16 : vector<8x1xf32>
    %19 = vector.broadcast %18 : vector<8x1xf32> to vector<8x32xf32>
    %20 = arith.mulf %8, %19 : vector<8x32xf32>
    %21 = vector.broadcast %1 : vector<1x32xf32> to vector<8x32xf32>
    %22 = arith.mulf %21, %20 : vector<8x32xf32>
    %23 = vector.broadcast %2 : vector<1x32xf32> to vector<8x32xf32>
    %24 = arith.addf %22, %23 : vector<8x32xf32>
    %c0_10 = arith.constant 0 : index
    %c0_11 = arith.constant 0 : index
    %25 = vector.load %arg4[%c0_10, %c0_11] : memref<8x32xf32, #tpu.memory_space<vmem>>, vector<8x32xf32>
    tpu.vector_store %arg4[%c0_10, %c0_11], %24 {strides = array<i32>} : memref<8x32xf32, #tpu.memory_space<vmem>>, vector<8x32xf32>,
    return
  }
  func.func @transform_0(%arg0: i32) -> (i32, i32) {
    %c0_i32 = arith.constant 0 : i32
    %c0_i32_0 = arith.constant 0 : i32
    return %arg0, %c0_i32 : i32, i32
  }
  func.func @transform_1(%arg0: i32) -> (i32, i32) {
    %c0_i32 = arith.constant 0 : i32
    %c0_i32_0 = arith.constant 0 : i32
    %c0_i32_1 = arith.constant 0 : i32
    return %c0_i32, %c0_i32_0 : i32, i32
  }
  func.func @transform_2(%arg0: i32) -> (i32, i32) {
    %c0_i32 = arith.constant 0 : i32
    %c0_i32_0 = arith.constant 0 : i32
    %c0_i32_1 = arith.constant 0 : i32
    return %c0_i32, %c0_i32_0 : i32, i32
  }
  func.func @transform_3(%arg0: i32) -> (i32, i32) {
    %c0_i32 = arith.constant 0 : i32
    %c0_i32_0 = arith.constant 0 : i32
    return %arg0, %c0_i32 : i32, i32
  }
}

</mosaic_0001>

<bundles_post_ra>
// kernel: tpu_custom_call.1
= control target key start
LH: loop header
LB: loop body
LE: loop exit
PB: predicated region body
PF: predicated region fallthrough
CT: control target
= control target key end

     0   :  { %8 = vsyncpa [#allocation3], 0  ;;  %s668_s0 = inlined_call_operand.hbm [shape: f32[16,32], index: 0, kind: input, shape index: {}]   ;;  %s669_s1 = inlined_call_operand.vmem [shape: f32[1,32], index: 1, kind: input, shape index: {}]   ;;  %s670_s2 = inlined_call_operand.vmem [shape: f32[1,32], index: 2, kind: input, shape index: {}]   ;;  %s671_s3 = inlined_call_operand.hbm [shape: f32[16,32], index: 3, kind: output, shape index: {}]  }
   0x1   :  { %10 = vsyncpa [#allocation3 + $0x1], 0 }
   0x2   :  { %11 = vsyncpa [#allocation4], 0 }
   0x3   :  { %13 = vsyncpa [#allocation4 + $0x1], 0  ;;  %s494_s12 = smov 0   ;;  %s496_s13 = smov 0  }
   0x4   :  { %s498_s14 = smov 0   ;;  %s500_s15 = smov 0  }
   0x5 LB: > { %s515_s16 = sadd.s32 4294967295, %s470_s15   ;;  %s310_s17 = sadd.s32 4294967294, %s470_s15   ;;  %s470_s15 = sphi %s500_s15, %s686_s15   ;;  %s466_s14 = sphi %s498_s14, %s685_s14   ;;  %s462_s13 = sphi %s496_s13, %s684_s13   ;;  %s458_s12 = sphi %s494_s12, %s683_s12  }
   0x6   : > { %s519_s18 = sadd.s32 1, %s470_s15   ;;  %s26_s19 = sadd.s32 1, %s466_s14 }
   0x7   : > { %s23_s20 = ssub.s32 %s470_s15, %s519_s18  ;;  %p33_p0 = scmp.ne.s32.totalorder %s466_s14, %s462_s13 }
   0x8   : > { %p24_p1 = scmp.eq.s32.totalorder %s23_s20, 0  ;;  %p34_p2 = scmp.eq.s32.totalorder %s470_s15, 0 }
   0x9   : > { %p39_p3 = scmp.ne.s32.totalorder %s462_s13, %s458_s12  ;;  %p40_p4 = scmp.eq.s32.totalorder %s515_s16, 0 }
   0xa   : > { %s531_s21 = scalar_select %p24_p1, %s466_s14, %s26_s19  }
   0xb   : > { %p533_p5 = por %p34_p2, %p33_p0  ;;  %p537_p6 = por %p40_p4, %p39_p3 }
   0xc   : > { %p105_p7 = scmp.eq.s32.totalorder %s515_s16, 1  ;;  %p111_p8 = scmp.eq.s32.totalorder %s310_s17, 1 }
   0xd   : > { %p336_p10 = scmp.lt.s32.totalorder %s470_s15, 2  ;;  %s137_s26 = sand.u32 1, %s466_s14  }
   0xe   : > { %p544_p11 = por %p105_p7, %p33_p0  ;;  %p548_p12 = por %p111_p8, %p39_p3 }
   0xf   : > { %s314_s27 = sshll.u32 %s470_s15, 7  ;;  %s313_s28 = sshll.u32 %s137_s26, 3 }
  0x10   : > { %s675_s24 = scalar_select %p544_p11, 1, 0 }
  0x11   : > { %s676_s25 = scalar_select %p548_p12, 1, 0 }
  0x12   : > { %s557_s4 = scalar_lea.hbm %s668_s0, %s314_s27  ;;  %s141_s5 = scalar_lea.vmem [#allocation2], %s313_s28 }
  0x13   : > { %s148_s6 = sshll.u32 %s141_s5, 4  ;;  %p561_p13 = pnand %p336_p10, %p533_p5  ;;  %s565_s6 = int_to_ptr.vmem [resolvable:$true] %s148_s6 }
  0x14   : > { %s138_s8 = scalar_lea.sflag [#allocation3], %s137_s26  ;;  %s374_s9 = scalar_lea.hbm %s557_s4, 128 }
  0x15   : > { %p375_p2 = scmp.ne.s32.totalorder %s557_s4, %s374_s9  ;;  %p376_p3 = pneg %p561_p13 }
  0x16   : > { %s379_s17 = scalar_lea.hbm %s668_s0, 256  ;;  %p380_p5 = scmp.lt.u32.totalorder %s557_s4, %s668_s0 }
  0x17   : > { %p377_p4 = pnand %p376_p3, %p375_p2  ;;  %p381_p8 = scmp.lt.u32.totalorder %s379_s17, %s374_s9 }
  0x18   : > { %p383_p9 = scmp.lt.u32.totalorder %s374_s9, %s557_s4 }
  0x19   : > { %p378_p7 = pneg %p377_p4  ;;  %p382_p10 = por %p381_p8, %p380_p5 }
  0x1b   : > { %p384_p0 = por %p383_p9, %p382_p10 }
  0x1d   : > { %p385_p1 = pnand %p384_p0, %p378_p7 }
  0x1f   : > { %388 = shalt.err (!%p385_p1)
}
  0x20   : > { %s389_s22 = scalar_lea.vmem %s565_s6, 128  ;;  %s472_s26 = smov [#allocation2]  }
  0x21   : > { %p390_p2 = scmp.ne.s32.totalorder %s565_s6, %s389_s22  ;;  %s394_s27 = sshll.u32 %s472_s26, 4  ;;  %s395_s27 = int_to_ptr.vmem [resolvable:$false] %s394_s27 }
  0x22   : > { %s396_s28 = scalar_lea.vmem %s395_s27, 256  ;;  %p397_p11 = scmp.lt.s32.totalorder %s565_s6, %s395_s27 }
  0x23   : > { %p392_p4 = pnand %p390_p2, %p376_p3  ;;  %p398_p5 = scmp.lt.s32.totalorder %s396_s28, %s389_s22 }
  0x25   : > { %p393_p12 = pneg %p392_p4  ;;  %p399_p8 = por %p398_p5, %p397_p11 }
  0x27   : > { %p400_p9 = pnand %p399_p8, %p393_p12 }
  0x29   : > { %403 = shalt.err (!%p400_p9)
}
  0x2a   : > { %331 = dma.hbm_to_vmem [thread:$0]  (!%p561_p13), %s557_s4, 128, %s565_s6, %s138_s8  }
  0x2b   : > { %p678_p0 = scmp.lt.s32.totalorder %s470_s15, 3  ;;  %p679_p1 = scmp.ge.s32.totalorder %s470_s15, 1 }
  0x2d   : > { %p154_p3 = pnand %p679_p1, %p678_p0 }
  0x2e   : > { %s599_s29 = sand.u32 (!%p154_p3), 1, %s462_s13  }
  0x2f   : > { %157 = sbr.rel (%p154_p3) target bundleno = 398 (0x18e), region = 32  ;;  %s316_s30 = sshll.u32 (!%p154_p3), %s599_s29, 3 }
  0x30   : > { %s160_s5 = scalar_lea.sflag (!%p154_p3), [#allocation3], %s599_s29  ;;  %s163_s7 = scalar_lea.vmem (!%p154_p3), [#allocation2], %s316_s30 }
  0x36   : > { %449 = dma.done.wait (%p537_p6), %s160_s5, 128  }
  0x37   : > { %451 = vsyncadd (%p537_p6), %s160_s5, 4294967168  ;;  %vm189_vm0 = vcmask 261120   ;;  %v186_v0 = vld [vmem:[%s163_s7] sm:$0xff]  ;;  %s321_s9 = sshll.u32 %s515_s16, 7  ;;  %s185_s10 = scalar_lea.vmem [#allocation5], %s316_s30 }
  0x38   : > { %v190_v1 = vsel %vm189_vm0, %v186_v0, 0.0  ;;  %v318_v16 = vld [vmem:[%s669_s1] ss:$0 sm:$0xff]  ;;  %s240_s11 = sshll.u32 %s185_s10, 4  ;;  %s623_s20 = scalar_lea.hbm %s671_s3, %s321_s9  ;;  %s625_s11 = int_to_ptr.vmem [resolvable:$true] %s240_s11 }
  0x39   : > { %191 = vadd.xlane.f32.xlu0 %v190_v1  ;;  %v319_v18 = vld [vmem:[%s670_s2] ss:$0 sm:$0xff]  ;;  %s227_s22 = scalar_lea.sflag [#allocation4], %s599_s29  ;;  %s404_s26 = scalar_lea.vmem %s625_s11, 128 }
  0x3a   : > { %p405_p6 = scmp.ne.s32.totalorder %s625_s11, %s404_s26  ;;  %p680_p11 = scmp.ne.s32.totalorder %s675_s24, 0 }
  0x3b   : > { %s473_s16 = smov [#allocation5]  }
  0x3c   : > { %p406_p12 = pnand %p405_p6, %p680_p11  ;;  %s408_s27 = sshll.u32 %s473_s16, 4  ;;  %s409_s27 = int_to_ptr.vmem [resolvable:$false] %s408_s27 }
  0x3d   : > { %s410_s28 = scalar_lea.vmem %s409_s27, 256  ;;  %p411_p7 = scmp.lt.s32.totalorder %s625_s11, %s409_s27 }
  0x3e   : > { %p407_p13 = pneg %p406_p12  ;;  %p412_p10 = scmp.lt.s32.totalorder %s410_s28, %s404_s26 }
  0x40   : > { %p413_p2 = por %p412_p10, %p411_p7 }
  0x42   : > { %p414_p4 = pnand %p413_p2, %p407_p13 }
  0xc6   : > { %v192_v2 = vpop.xlane.xlu0 %191 }
  0xc7   : > { %v193_v3 = vmul.f32 0.03125, %v192_v2 }
  0xc9   : > { %v194_v4 = vsub.f32 %v186_v0, %v193_v3 }
  0xcb   : > { %v195_v5 = vmul.f32 %v194_v4, %v194_v4 }
  0xcd   : > { %v196_v6 = vsel %vm189_vm0, %v195_v5, 0.0 }
  0xce   : > { %197 = vadd.xlane.f32.xlu0 %v196_v6 }
 0x15b   : > { %v198_v7 = vpop.xlane.xlu0 %197 }
 0x15c   : > { %v199_v8 = vmul.f32 0.032258064, %v198_v7 }
 0x15e   : > { %370 = vrsqrt.f32 %v199_v8  ;;  %vm202_vm1 = vcmp.eq.f32.partialorder %v199_v8, inf  ;;  %v205_v11 = vand.u32 2147483648, %v199_v8  ;;  %vm204_vm2 = vcmp.eq.f32.partialorder %v199_v8, 0.0 }
 0x168   : > { %v371_v9 = vpop.eup %370 }
 0x169   : > { %v201_v10 = vmul.f32 %v371_v9, %v199_v8 }
 0x16b   : > { %v203_v12 = vsel %vm202_vm1, %v199_v8, %v201_v10 }
 0x16c   : > { %v206_v13 = vsel %vm204_vm2, %v205_v11, %v203_v12 }
 0x16d   : > { %v207_v14 = vadd.f32 1e-06, %v206_v13 }
 0x16f   : > { %372 = vrcp.f32 %v207_v14 }
 0x179   : > { %v373_v15 = vpop.eup %372 }
 0x17a   : > { %v210_v17 = vmul.f32 %v373_v15, %v194_v4 }
 0x17c   : > { %v217_v19 = vmul.f32 %v318_v16, %v210_v17 }
 0x17e   : > { %v224_v20 = vadd.f32 %v319_v18, %v217_v19 }
 0x180   : > { %225 = vst.msk [vmem:[%s185_s10] sm:$0xff] %vm189_vm0, %v224_v20 }
 0x181   : > { %417 = shalt.err (!%p414_p4)
}
 0x182   : > { %s418_s29 = scalar_lea.hbm %s623_s20, 128  ;;  %s422_s7 = scalar_lea.hbm %s671_s3, 256 }
 0x183   : > { %p419_p5 = scmp.ne.s32.totalorder %s623_s20, %s418_s29  ;;  %p423_p0 = scmp.lt.u32.totalorder %s623_s20, %s671_s3 }
 0x184   : > { %p424_p1 = scmp.lt.u32.totalorder %s422_s7, %s418_s29  ;;  %p426_p6 = scmp.lt.u32.totalorder %s418_s29, %s623_s20 }
 0x185   : > { %p420_p8 = pnand %p419_p5, %p680_p11 }
 0x186   : > { %p425_p3 = por %p424_p1, %p423_p0 }
 0x187   : > { %p421_p9 = pneg %p420_p8 }
 0x188   : > { %p427_p12 = por %p426_p6, %p425_p3 }
 0x18a   : > { %p428_p13 = pnand %p427_p12, %p421_p9 }
 0x18c   : > { %431 = shalt.err (!%p428_p13)
}
 0x18d   : > { %326 = dma.vmem_to_hbm [thread:$0]  (%p680_p11), %s625_s11, 128, %s623_s20, %s227_s22  }
 0x18e PF: > { %s252_s6 = sand.u32 1, %s458_s12   ;;  %p681_p7 = scmp.ne.s32.totalorder %s676_s25, 0 }
 0x18f   : > { %p682_p10 = scmp.ge.s32.totalorder %s470_s15, 2  ;;  %s253_s8 = scalar_lea.sflag [#allocation4], %s252_s6 }
 0x191   : > { %p333_p2 = pnand %p682_p10, %p681_p7 }
 0x193   : > { %453 = dma.done.wait (!%p333_p2), %s253_s8, 128  }
 0x194   : > { %455 = vsyncadd (!%p333_p2), %s253_s8, 4294967168  ;;  %p16_p4 = scmp.ge.s32.totalorder %s519_s18, 4   ;;  %s683_s12 = smov %s462_s13 }
 0x195   : > { %s684_s13 = smov %s466_s14  ;;  %s685_s14 = smov %s531_s21 }
 0x196   : > { %s686_s15 = smov %s519_s18  ;;  %18 = sbr.rel (!%p16_p4) target bundleno = 5 (0x5), region = 77 }
 0x19d   :  { %258 = vsyncpa [#allocation3], 1 }
 0x19e   :  { %260 = vsyncpa [#allocation3 + $0x1], 1 }
 0x19f   :  { %261 = vsyncpa [#allocation4], 1 }
 0x1a0   :  { %263 = vsyncpa [#allocation4 + $0x1], 1 }

</bundles_post_ra>
